<compile_context>
chip_gen: v6e
topology: v6e:2x2x1
jax: 0.10.0
libtpu: 0.0.40
codegen_flags: <defaults>
</compile_context>

<pallas_src>
import numpy as np
import jax
import jax.numpy as jnp
from jax.experimental import pallas as pl
from jax.experimental.pallas import tpu as pltpu

# ---- static problem configuration (plays the role of `args`) -------------------
C, H, W = 4, 32, 16          # spectral channels, height, image width
STEP = 2                     # args.step (dispersion shift per channel)
W_EXT = W + (C - 1) * STEP   # measurement-domain width (= 22)
RHO = 0.01                   # args.rho
ITER_NUM = 3                 # args.iter_num (must be >= 1; iteration 0 is peeled)
DTYPE = jnp.float32

# Binary sensing masks are exactly representable in bf16 -> halves Phi's HBM DMA and
# VMEM footprint (v6e/v7x). In-kernel compute is up-cast to f32 (v5e has no bf16 VPU).
# TODO(synk): set to jnp.float32 if a non-binary Phi is ever used.
PHI_STORAGE_DTYPE = jnp.bfloat16

# H-tile size: rows are independent, so the grid is over H ("parallel" semantics).
TH = 16
assert H % TH == 0 and TH % 8 == 0, "H tile must be a multiple of 8 and divide H"

# Precomputed compact dispersion-window mask: channel c owns lanes [STEP*c, STEP*c + W).
# For an elementwise denoiser, shift(denoise(shift_back(t))) == window * denoise(t).
_window_np = np.zeros((C, 1, W_EXT), np.float32)
for _c in range(C):
    _window_np[_c, 0, STEP * _c:STEP * _c + W] = 1.0
WINDOW = jnp.asarray(_window_np)


# ---------------------------- fused Pallas kernel --------------------------------
def _admm_iterations(phi, y, window, v, out_ref):
    """All ADMM iterations for one H-tile; (v, u) live in vregs across iterations."""
    inv_rho = 1.0 / RHO
    # Loop-invariant: PhiPhi_T and its reciprocal hoisted; reciprocal on the EUP slot.
    inv_denom = pl.reciprocal(jnp.sum(phi * phi, axis=0) + RHO)          # [TH, W_EXT]

    # --- iteration 0 peeled: u == 0  =>  vu = v, t = x1, u = rho*(x1 - v) ---
    resid = (y - jnp.sum(phi * v, axis=0)) * inv_denom
    x1 = v + phi * resid[None, :, :]
    # TODO(synk): denoiser is an injected external nn.Module (FFDNet/TV/DIP). Here it is a
    # deterministic elementwise clamp-to-[0,1] surrogate; window*clip is only equivalent to
    # shift(denoise(shift_back(.))) because the surrogate is elementwise — a real spatial
    # denoiser must run outside this kernel.
    v = window * jnp.clip(x1, 0.0, 1.0)
    u = RHO * (x1 - v)

    def body(_, carry):
        v, u = carry
        vu = v - u * inv_rho                                             # v - u/rho
        resid = (y - jnp.sum(phi * vu, axis=0)) * inv_denom              # (y - A(Phi,vu)) / (PhiPhi_T + rho)
        x1 = vu + phi * resid[None, :, :]                                # vu + At(Phi, resid)
        v = window * jnp.clip(x1 + u * inv_rho, 0.0, 1.0)                # shift(denoise(shift_back(t)))
        u = u + RHO * (x1 - v)
        return (v, u)

    # fori_loop bounds live ranges when ITER_NUM is large; unrolled when short.
    v, _ = jax.lax.fori_loop(1, ITER_NUM, body, (v, u), unroll=ITER_NUM <= 8)

    # Lane-dense full-width store (no unaligned per-channel slices in the kernel);
    # shift_back is done in the XLA wrapper.
    out_ref[...] = v.astype(out_ref.dtype)


def admm_kernel_fused_init(phi_ref, y_ref, win_ref, out_ref):
    """x0 = None path: v init = At(Phi, y) = Phi * y computed in-kernel (no x0 HBM traffic)."""
    phi = phi_ref[...].astype(jnp.float32)
    y = y_ref[...]
    v0 = phi * y[None, :, :]
    _admm_iterations(phi, y, win_ref[...], v0, out_ref)


def admm_kernel_with_x0(phi_ref, y_ref, win_ref, x0_ref, out_ref):
    """Explicit-x0 path (keeps the original forward(x0, y, Phi) semantics)."""
    phi = phi_ref[...].astype(jnp.float32)
    _admm_iterations(phi, y_ref[...], win_ref[...], x0_ref[...], out_ref)


# ---------------------------- pallas_call wrapper ---------------------------------
_PHI_SPEC = pl.BlockSpec((C, TH, W_EXT), lambda i: (0, i, 0))
_Y_SPEC = pl.BlockSpec((TH, W_EXT), lambda i: (i, 0))
_WIN_SPEC = pl.BlockSpec((C, 1, W_EXT), lambda i: (0, 0, 0))
_CUBE_SPEC = pl.BlockSpec((C, TH, W_EXT), lambda i: (0, i, 0))

# TODO(synk): for production SCI sizes (C~28, H=W>=256, W_EXT padded to a multiple of 128)
# also set vmem_limit_bytes here and pick TH so the double-buffered phi/y/out tiles fit
# v7x's 64 MiB VMEM / the 32 MiB scoped default on v6e.
_COMPILER_PARAMS = pltpu.CompilerParams(dimension_semantics=("parallel",))


def _call(kernel, in_specs, *args):
    return pl.pallas_call(
        kernel,
        grid=(H // TH,),
        in_specs=in_specs,
        out_specs=_CUBE_SPEC,
        out_shape=jax.ShapeDtypeStruct((C, H, W_EXT), DTYPE),
        compiler_params=_COMPILER_PARAMS,
    )(*args)


def shift_back_jax(x):  # [C, H, W_EXT] -> [C, H, W]   (static slices, cheap in XLA)
    return jnp.stack([x[i, :, STEP * i:STEP * i + W] for i in range(C)], axis=0)


def shift_jax(x):       # [C, H, W] -> [C, H, W_EXT]
    return jnp.stack(
        [jnp.pad(x[i], ((0, 0), (STEP * i, W_EXT - W - STEP * i))) for i in range(C)],
        axis=0)


@jax.jit
def _admm_forward_fused(phi, y):
    v = _call(admm_kernel_fused_init, [_PHI_SPEC, _Y_SPEC, _WIN_SPEC],
              phi.astype(PHI_STORAGE_DTYPE), y, WINDOW)
    return shift_back_jax(v)


@jax.jit
def _admm_forward_with_x0(phi, y, x0):
    v = _call(admm_kernel_with_x0, [_PHI_SPEC, _Y_SPEC, _WIN_SPEC, _CUBE_SPEC],
              phi.astype(PHI_STORAGE_DTYPE), y, WINDOW, x0)
    return shift_back_jax(v)


def admm_solve(x0, y, phi):
    """ADMM.forward / ADMM.solve: one fused Pallas call + XLA-side shift_back."""
    if x0 is None:
        return _admm_forward_fused(phi, y)
    return _admm_forward_with_x0(phi, y, x0)


# ---------------------------- pure-JAX reference -----------------------------------
def _denoiser_ref(x):
    return jnp.clip(x, 0.0, 1.0)


def admm_solve_ref(x0, y, phi):
    v = x0 if x0 is not None else phi * y[None, :, :]
    u = jnp.zeros((C, H, W_EXT), DTYPE)
    phiphi_t = jnp.sum(phi * phi, axis=0)
    for _ in range(ITER_NUM):
        vu = v - u / RHO
        x1 = vu + phi * ((y - jnp.sum(phi * vu, axis=0)) / (phiphi_t + RHO))[None]
        x = _denoiser_ref(shift_back_jax(x1 + u / RHO))
        v = shift_jax(x)
        u = u + RHO * (x1 - v)
    return shift_back_jax(v)


if __name__ == "__main__":
    key = jax.random.PRNGKey(0)
    k1, k2 = jax.random.split(key)

    # synthetic scene, binary sensing masks, simulated measurement
    scene = jax.random.uniform(k1, (C, H, W), dtype=DTYPE)                    # ground-truth cube
    phi = (jax.random.uniform(k2, (C, H, W_EXT), dtype=DTYPE) > 0.5).astype(DTYPE)
    y = jnp.sum(phi * shift_jax(scene), axis=0)                               # A(Phi, shift(scene))

    # Path 1: x0 = None -> At(Phi, y) init fused inside the kernel.
    out = jax.block_until_ready(admm_solve(None, y, phi))
    ref = admm_solve_ref(None, y, phi)
    assert out.shape == (C, H, W)
    assert jnp.allclose(out, ref, rtol=1e-4, atol=1e-4), "fused-init path mismatch vs reference"

    # Path 2: explicit x0 (original forward(x0, y, Phi) signature).
    x0 = phi * y[None, :, :]
    out2 = jax.block_until_ready(admm_solve(x0, y, phi))
    ref2 = admm_solve_ref(x0, y, phi)
    assert jnp.allclose(out2, ref2, rtol=1e-4, atol=1e-4), "explicit-x0 path mismatch vs reference"

    print("KERNEL_OK")
</pallas_src>

<mosaic_0001>
module attributes {stable_mosaic.version = 11 : i64} {
  func.func @admm_kernel_fused_init(%arg0: i32, %arg1: memref<4x16x22xbf16, #tpu.memory_space<vmem>>, %arg2: memref<16x22xf32, #tpu.memory_space<vmem>>, %arg3: memref<4x1x22xf32, #tpu.memory_space<vmem>>, %arg4: memref<4x16x22xf32, #tpu.memory_space<vmem>>) attributes {dimension_semantics = [#tpu.dimension_semantics<parallel>], iteration_bounds = array<i64: 2>, scalar_prefetch = 0 : i64, scratch_operands = 0 : i64, tpu.core_type = #tpu.core_type<tc>, window_params = [{transform_indices = @transform_0, window_bounds = array<i64: 4, 16, 22>}, {transform_indices = @transform_1, window_bounds = array<i64: 16, 22>}, {pipeline_mode = #tpu.pipeline_mode<synchronous>, transform_indices = @transform_2, window_bounds = array<i64: 4, 1, 22>}, {transform_indices = @transform_3, window_bounds = array<i64: 4, 16, 22>}]} {
    %c0 = arith.constant 0 : index
    %c0_0 = arith.constant 0 : index
    %c0_1 = arith.constant 0 : index
    %0 = vector.load %arg1[%c0, %c0_0, %c0_1] : memref<4x16x22xbf16, #tpu.memory_space<vmem>>, vector<4x16x22xbf16>
    %1 = arith.extf %0 : vector<4x16x22xbf16> to vector<4x16x22xf32>
    %c0_2 = arith.constant 0 : index
    %c0_3 = arith.constant 0 : index
    %2 = vector.load %arg2[%c0_2, %c0_3] : memref<16x22xf32, #tpu.memory_space<vmem>>, vector<16x22xf32>
    %3 = vector.shape_cast %2 : vector<16x22xf32> to vector<1x16x22xf32>
    %4 = vector.broadcast %3 : vector<1x16x22xf32> to vector<4x16x22xf32>
    %5 = arith.mulf %1, %4 : vector<4x16x22xf32>
    %c0_4 = arith.constant 0 : index
    %c0_5 = arith.constant 0 : index
    %c0_6 = arith.constant 0 : index
    %6 = vector.load %arg3[%c0_4, %c0_5, %c0_6] : memref<4x1x22xf32, #tpu.memory_space<vmem>>, vector<4x1x22xf32>
    %7 = arith.mulf %1, %1 : vector<4x16x22xf32>
    %cst = arith.constant dense<0.000000e+00> : vector<16x22xf32>
    %8 = vector.multi_reduction <add>, %7, %cst [0] : vector<4x16x22xf32> to vector<16x22xf32>
    %cst_7 = arith.constant 0.00999999977 : f32
    %9 = vector.broadcast %cst_7 : f32 to vector<16x22xf32>
    %10 = arith.addf %8, %9 : vector<16x22xf32>
    %11 = tpu.reciprocal %10 : vector<16x22xf32> -> vector<16x22xf32>
    %12 = arith.mulf %1, %5 : vector<4x16x22xf32>
    %cst_8 = arith.constant dense<0.000000e+00> : vector<16x22xf32>
    %13 = vector.multi_reduction <add>, %12, %cst_8 [0] : vector<4x16x22xf32> to vector<16x22xf32>
    %14 = arith.subf %2, %13 : vector<16x22xf32>
    %15 = arith.mulf %14, %11 : vector<16x22xf32>
    %16 = vector.shape_cast %15 : vector<16x22xf32> to vector<1x16x22xf32>
    %17 = vector.broadcast %16 : vector<1x16x22xf32> to vector<4x16x22xf32>
    %18 = arith.mulf %1, %17 : vector<4x16x22xf32>
    %19 = arith.addf %5, %18 : vector<4x16x22xf32>
    %cst_9 = arith.constant 0.000000e+00 : f32
    %cst_10 = arith.constant 1.000000e+00 : f32
    %20 = vector.broadcast %cst_9 : f32 to vector<4x16x22xf32>
    %21 = arith.maximumf %20, %19 : vector<4x16x22xf32>
    %22 = vector.broadcast %cst_10 : f32 to vector<4x16x22xf32>
    %23 = arith.minimumf %22, %21 : vector<4x16x22xf32>
    %24 = vector.broadcast %6 : vector<4x1x22xf32> to vector<4x16x22xf32>
    %25 = arith.mulf %24, %23 : vector<4x16x22xf32>
    %26 = arith.subf %19, %25 : vector<4x16x22xf32>
    %cst_11 = arith.constant 0.00999999977 : f32
    %27 = vector.broadcast %cst_11 : f32 to vector<4x16x22xf32>
    %28 = arith.mulf %27, %26 : vector<4x16x22xf32>
    %c0_i32 = arith.constant 0 : i32
    %cst_12 = arith.constant 1.000000e+02 : f32
    %29 = vector.broadcast %cst_12 : f32 to vector<4x16x22xf32>
    %30 = arith.mulf %28, %29 : vector<4x16x22xf32>
    %31 = arith.subf %25, %30 : vector<4x16x22xf32>
    %32 = arith.mulf %1, %31 : vector<4x16x22xf32>
    %cst_13 = arith.constant dense<0.000000e+00> : vector<16x22xf32>
    %33 = vector.multi_reduction <add>, %32, %cst_13 [0] : vector<4x16x22xf32> to vector<16x22xf32>
    %34 = arith.subf %2, %33 : vector<16x22xf32>
    %35 = arith.mulf %34, %11 : vector<16x22xf32>
    %36 = vector.shape_cast %35 : vector<16x22xf32> to vector<1x16x22xf32>
    %37 = vector.broadcast %36 : vector<1x16x22xf32> to vector<4x16x22xf32>
    %38 = arith.mulf %1, %37 : vector<4x16x22xf32>
    %39 = arith.addf %31, %38 : vector<4x16x22xf32>
    %cst_14 = arith.constant 1.000000e+02 : f32
    %40 = vector.broadcast %cst_14 : f32 to vector<4x16x22xf32>
    %41 = arith.mulf %28, %40 : vector<4x16x22xf32>
    %42 = arith.addf %39, %41 : vector<4x16x22xf32>
    %cst_15 = arith.constant 0.000000e+00 : f32
    %cst_16 = arith.constant 1.000000e+00 : f32
    %43 = vector.broadcast %cst_15 : f32 to vector<4x16x22xf32>
    %44 = arith.maximumf %43, %42 : vector<4x16x22xf32>
    %45 = vector.broadcast %cst_16 : f32 to vector<4x16x22xf32>
    %46 = arith.minimumf %45, %44 : vector<4x16x22xf32>
    %47 = vector.broadcast %6 : vector<4x1x22xf32> to vector<4x16x22xf32>
    %48 = arith.mulf %47, %46 : vector<4x16x22xf32>
    %49 = arith.subf %39, %48 : vector<4x16x22xf32>
    %cst_17 = arith.constant 0.00999999977 : f32
    %50 = vector.broadcast %cst_17 : f32 to vector<4x16x22xf32>
    %51 = arith.mulf %50, %49 : vector<4x16x22xf32>
    %52 = arith.addf %28, %51 : vector<4x16x22xf32>
    %c1_i32 = arith.constant 1 : i32
    %cst_18 = arith.constant 1.000000e+02 : f32
    %53 = vector.broadcast %cst_18 : f32 to vector<4x16x22xf32>
    %54 = arith.mulf %52, %53 : vector<4x16x22xf32>
    %55 = arith.subf %48, %54 : vector<4x16x22xf32>
    %56 = arith.mulf %1, %55 : vector<4x16x22xf32>
    %cst_19 = arith.constant dense<0.000000e+00> : vector<16x22xf32>
    %57 = vector.multi_reduction <add>, %56, %cst_19 [0] : vector<4x16x22xf32> to vector<16x22xf32>
    %58 = arith.subf %2, %57 : vector<16x22xf32>
    %59 = arith.mulf %58, %11 : vector<16x22xf32>
    %60 = vector.shape_cast %59 : vector<16x22xf32> to vector<1x16x22xf32>
    %61 = vector.broadcast %60 : vector<1x16x22xf32> to vector<4x16x22xf32>
    %62 = arith.mulf %1, %61 : vector<4x16x22xf32>
    %63 = arith.addf %55, %62 : vector<4x16x22xf32>
    %cst_20 = arith.constant 1.000000e+02 : f32
    %64 = vector.broadcast %cst_20 : f32 to vector<4x16x22xf32>
    %65 = arith.mulf %52, %64 : vector<4x16x22xf32>
    %66 = arith.addf %63, %65 : vector<4x16x22xf32>
    %cst_21 = arith.constant 0.000000e+00 : f32
    %cst_22 = arith.constant 1.000000e+00 : f32
    %67 = vector.broadcast %cst_21 : f32 to vector<4x16x22xf32>
    %68 = arith.maximumf %67, %66 : vector<4x16x22xf32>
    %69 = vector.broadcast %cst_22 : f32 to vector<4x16x22xf32>
    %70 = arith.minimumf %69, %68 : vector<4x16x22xf32>
    %71 = vector.broadcast %6 : vector<4x1x22xf32> to vector<4x16x22xf32>
    %72 = arith.mulf %71, %70 : vector<4x16x22xf32>
    %73 = arith.subf %63, %72 : vector<4x16x22xf32>
    %cst_23 = arith.constant 0.00999999977 : f32
    %74 = vector.broadcast %cst_23 : f32 to vector<4x16x22xf32>
    %75 = arith.mulf %74, %73 : vector<4x16x22xf32>
    %76 = arith.addf %52, %75 : vector<4x16x22xf32>
    %c0_24 = arith.constant 0 : index
    %c0_25 = arith.constant 0 : index
    %c0_26 = arith.constant 0 : index
    %77 = vector.load %arg4[%c0_24, %c0_25, %c0_26] : memref<4x16x22xf32, #tpu.memory_space<vmem>>, vector<4x16x22xf32>
    tpu.vector_store %arg4[%c0_24, %c0_25, %c0_26], %72 {strides = array<i32>} : memref<4x16x22xf32, #tpu.memory_space<vmem>>, vector<4x16x22xf32>,
    return
  }
  func.func @transform_0(%arg0: i32) -> (i32, i32, i32) {
    %c0_i32 = arith.constant 0 : i32
    %c0_i32_0 = arith.constant 0 : i32
    %c0_i32_1 = arith.constant 0 : i32
    return %c0_i32, %arg0, %c0_i32_0 : i32, i32, i32
  }
  func.func @transform_1(%arg0: i32) -> (i32, i32) {
    %c0_i32 = arith.constant 0 : i32
    %c0_i32_0 = arith.constant 0 : i32
    return %arg0, %c0_i32 : i32, i32
  }
  func.func @transform_2(%arg0: i32) -> (i32, i32, i32) {
    %c0_i32 = arith.constant 0 : i32
    %c0_i32_0 = arith.constant 0 : i32
    %c0_i32_1 = arith.constant 0 : i32
    %c0_i32_2 = arith.constant 0 : i32
    return %c0_i32, %c0_i32_0, %c0_i32_1 : i32, i32, i32
  }
  func.func @transform_3(%arg0: i32) -> (i32, i32, i32) {
    %c0_i32 = arith.constant 0 : i32
    %c0_i32_0 = arith.constant 0 : i32
    %c0_i32_1 = arith.constant 0 : i32
    return %c0_i32, %arg0, %c0_i32_0 : i32, i32, i32
  }
}

</mosaic_0001>

<bundles_post_ra>
// kernel: _admm_forward_fused.1
= control target key start
LH: loop header
LB: loop body
LE: loop exit
PB: predicated region body
PF: predicated region fallthrough
CT: control target
= control target key end

     0   :  { %s889_s12 = smov 0   ;;  %s891_s13 = smov 0   ;;  %s1211_s0 = inlined_call_operand.vmem [shape: bf16[4,32,22], index: 0, kind: input, shape index: {}]   ;;  %s1212_s1 = inlined_call_operand.vmem [shape: f32[32,22], index: 1, kind: input, shape index: {}]   ;;  %s1213_s2 = inlined_call_operand.vmem [shape: f32[4,1,22], index: 2, kind: input, shape index: {}]   ;;  %s1214_s3 = inlined_call_operand.vmem [shape: f32[4,32,22], index: 3, kind: output, shape index: {}]  }
   0x1   :  { %s893_s14 = smov 0  }
   0x2 LB: > { %s905_s15 = sadd.s32 4294967295, %s867_s14   ;;  %s908_s16 = sadd.s32 1, %s867_s14   ;;  %s867_s14 = sphi %s893_s14, %s1218_s14   ;;  %s863_s13 = sphi %s891_s13, %s1217_s13   ;;  %s859_s12 = sphi %s889_s12, %s1216_s12  }
   0x3   : > { %s17_s17 = ssub.s32 %s867_s14, %s908_s16  ;;  %s20_s18 = sadd.s32 1, %s863_s13 }
   0x4   : > { %p18_p0 = scmp.eq.s32.totalorder %s17_s17, 0  ;;  %p27_p1 = scmp.ne.s32.totalorder %s863_s13, %s859_s12 }
   0x5   : > { %p28_p2 = scmp.eq.s32.totalorder %s867_s14, 0  ;;  %p104_p3 = scmp.eq.s32.totalorder %s905_s15, 1 }
   0x6   : > { %s918_s19 = scalar_select %p18_p0, %s863_s13, %s20_s18  }
   0x7   : > { %p29_p4 = por %p28_p2, %p27_p1  ;;  %p920_p5 = por %p104_p3, %p27_p1 }
   0x8   : > { %p778_p6 = scmp.ge.s32.totalorder %s867_s14, 2 }
   0xa   : > { %129 = sbr.rel (%p778_p6) target bundleno = 21 (0x15), region = 20 }
   0xf   : > { %132 = sbr.rel (!%p29_p4) target bundleno = 21 (0x15), region = 24  ;;  %s134_s21 = sand.u32 (%p29_p4), 1, %s863_s13  }
  0x10   : > { %s796_s22 = sshll.u32 (%p29_p4), %s867_s14, 3  ;;  %s779_s23 = sshll.u32 (%p29_p4), %s134_s21, 5 }
  0x11   : > { %s139_s26 = scalar_lea.vmem (%p29_p4), %s1211_s0, %s796_s22  ;;  %s136_s27 = scalar_lea.vmem (%p29_p4), [#allocation2], %s779_s23 }
  0x12   : > { %v156_v0 = vld [vmem:[%s139_s26] sm:$0xff] (%p29_p4)   ;;  %v160_v1 = vld [vmem:[%s139_s26 + $0x10] sm:$0xff] (%p29_p4)  }
  0x13   : > { %v164_v2 = vld [vmem:[%s139_s26 + $0x20] sm:$0xff] (%p29_p4)   ;;  %157 = vst [vmem:[%s136_s27] sm:$0xff] (%p29_p4), %v156_v0   ;;  %161 = vst [vmem:[%s136_s27 + $0x8] sm:$0xff] (%p29_p4), %v160_v1   ;;  %v168_v3 = vld [vmem:[%s139_s26 + $0x30] sm:$0xff] (%p29_p4)  }
  0x14   : > { %165 = vst [vmem:[%s136_s27 + $0x10] sm:$0xff] %v164_v2   ;;  %169 = vst [vmem:[%s136_s27 + $0x18] sm:$0xff] %v168_v3  }
  0x15 PF: > { %p782_p7 = scmp.ge.s32.totalorder %s867_s14, 1  ;;  %p219_p8 = scmp.lt.s32.totalorder %s867_s14, 3 }
  0x17   : > { %p220_p9 = pnand %p782_p7, %p219_p8 }
  0x18   : > { %s226_s28 = sand.u32 (!%p220_p9), 1, %s859_s12   ;;  %s785_s29 = sshll.u32 (!%p220_p9), %s905_s15, 1 }
  0x19   : > { %223 = sbr.rel (%p220_p9) target bundleno = 154 (0x9a), region = 69  ;;  %s783_s30 = sshll.u32 (!%p220_p9), %s226_s28, 5 }
  0x1a   : > { %p255_p10 = scmp.lt.s32.totalorder (!%p220_p9), %s785_s29, 3  ;;  %s228_s4 = scalar_lea.vmem (!%p220_p9), [#allocation2], %s783_s30 }
  0x1b   : > { %s784_s23 = sshll.u32 (!%p220_p9), %s226_s28, 6 }
  0x1c   : > { %s1165_s12 = scalar_lea.vmem (!%p220_p9), [#allocation3], %s784_s23 }
  0x1e   : > { %v799_v4 = vld [vmem:[%s228_s4] sm:$0xff]   ;;  %v814_v5 = vld [vmem:[%s228_s4 + $0x8] sm:$0xff]   ;;  %v815_v6 = vld [vmem:[%s228_s4 + $0x10] sm:$0xff]   ;;  %vm299_vm0 = vcmask 179200   ;;  %s1220_s29 = smov (!%p255_p10, %s785_s29), 3  ;;  %s797_s24 = sshll.u32 (%p920_p5), %s905_s15, 4 }
  0x1f   : > { %v936_v7 = vunpack.c.l.bf16 %v799_v4  ;;  %v938_v8 = vunpack.c.h.bf16 %v799_v4  ;;  %v940_v9 = vunpack.c.l.bf16 %v814_v5  ;;  %v942_v10 = vunpack.c.h.bf16 %v814_v5  ;;  %v816_v11 = vld [vmem:[%s228_s4 + $0x18] sm:$0xff]   ;;  %s786_s5 = sshll.u32 %s1220_s29, 3  ;;  %s645_s27 = scalar_lea.vmem (%p920_p5), %s1214_s3, %s797_s24 }
  0x20   : > { %v944_v12 = vunpack.c.l.bf16 %v815_v6  ;;  %v946_v13 = vunpack.c.h.bf16 %v815_v6  ;;  %v948_v14 = vunpack.c.l.bf16 %v816_v11  ;;  %v950_v15 = vunpack.c.h.bf16 %v816_v11  ;;  %s258_s8 = scalar_lea.vmem %s1212_s1, %s786_s5 }
  0x21   : > { %v291_v16 = vmul.f32 %v936_v7, %v936_v7  ;;  %v292_v17 = vmul.f32 %v938_v8, %v938_v8  ;;  %v293_v18 = vmul.f32 %v940_v9, %v940_v9  ;;  %v294_v19 = vmul.f32 %v942_v10, %v942_v10  ;;  %v971_v26 = vld [vmem:[%s258_s8] sm:$0xff]  ;;  %v976_v30 = vld [vmem:[%s258_s8 + $0x8] sm:$0xff] }
  0x22   : > { %v295_v20 = vmul.f32 %v944_v12, %v944_v12  ;;  %v297_v21 = vmul.f32 %v948_v14, %v948_v14  ;;  %v296_v27 = vmul.f32 %v946_v13, %v946_v13  ;;  %v298_v31 = vmul.f32 %v950_v15, %v950_v15 }
  0x23   : > { %v300_v22 = vsel %vm299_vm0, %v291_v16, 0.0  ;;  %v301_v23 = vsel %vm299_vm0, %v293_v18, 0.0  ;;  %v307_v24 = vsel %vm299_vm0, %v292_v17, 0.0  ;;  %v308_v25 = vsel %vm299_vm0, %v294_v19, 0.0 }
  0x24   : > { %v302_v28 = vadd.f32 %v301_v23, %v300_v22  ;;  %v303_v29 = vsel %vm299_vm0, %v295_v20, 0.0  ;;  %v279_v32 = vmul.f32 %v936_v7, %v971_v26  ;;  %v281_v33 = vmul.f32 %v940_v9, %v971_v26 }
  0x25   : > { %v283_v34 = vmul.f32 %v944_v12, %v971_v26  ;;  %v305_v35 = vsel %vm299_vm0, %v297_v21, 0.0  ;;  %v285_v36 = vmul.f32 %v948_v14, %v971_v26  ;;  %v991_v38 = vmul.f32 %v938_v8, %v976_v30 }
  0x26   : > { %v304_v37 = vadd.f32 %v303_v29, %v302_v28  ;;  %v309_v39 = vadd.f32 %v308_v25, %v307_v24  ;;  %v318_v40 = vmul.f32 %v936_v7, %v279_v32  ;;  %v320_v41 = vmul.f32 %v940_v9, %v281_v33 }
  0x27   : > { %v322_v42 = vmul.f32 %v944_v12, %v283_v34  ;;  %v282_v43 = vmul.f32 %v942_v10, %v976_v30  ;;  %v284_v45 = vmul.f32 %v946_v13, %v976_v30  ;;  %v310_v46 = vsel %vm299_vm0, %v296_v27, 0.0 }
  0x28   : > { %v306_v44 = vadd.f32 %v305_v35, %v304_v37  ;;  %v326_v47 = vsel %vm299_vm0, %v318_v40, 0.0  ;;  %v327_v48 = vsel %vm299_vm0, %v320_v41, 0.0  ;;  %v312_v49 = vsel %vm299_vm0, %v298_v31, 0.0  ;;  %v1033_v35 = vld [vmem:[%s1213_s2] ss:$0 sm:$0xff] }
  0x29   : > { %v328_v51 = vadd.f32 %v327_v48, %v326_v47  ;;  %v311_v52 = vadd.f32 %v310_v46, %v309_v39  ;;  %v319_v53 = vmul.f32 %v938_v8, %v991_v38  ;;  %v324_v54 = vmul.f32 %v948_v14, %v285_v36 }
  0x2a   : > { %v314_v50 = vadd.f32 0.01, %v306_v44  ;;  %v329_v55 = vsel %vm299_vm0, %v322_v42, 0.0  ;;  %v286_v56 = vmul.f32 %v950_v15, %v976_v30  ;;  %v321_v57 = vmul.f32 %v942_v10, %v282_v43  ;;  %v1038_v42 = vld [vmem:[%s1213_s2 + $0x1] ss:$0 sm:$0xff] }
  0x2b   : > { %v313_v58 = vadd.f32 %v312_v49, %v311_v52  ;;  %v323_v59 = vmul.f32 %v946_v13, %v284_v45  ;;  %v333_v60 = vsel %vm299_vm0, %v319_v53, 0.0  ;;  %v330_v62 = vadd.f32 %v329_v55, %v328_v51 }
  0x2c   : > { %841 = vrcp.f32 %v314_v50  ;;  %v334_v61 = vsel %vm299_vm0, %v321_v57, 0.0  ;;  %v331_v0 = vsel %vm299_vm0, %v324_v54, 0.0  ;;  %v325_v2 = vmul.f32 %v950_v15, %v286_v56 }
  0x2d   : > { %v315_v63 = vadd.f32 0.01, %v313_v58  ;;  %v335_v1 = vadd.f32 %v334_v61, %v333_v60  ;;  %v336_v3 = vsel %vm299_vm0, %v323_v59, 0.0  ;;  %v332_v4 = vadd.f32 %v331_v0, %v330_v62 }
  0x2e   : > { %v338_v6 = vsel %vm299_vm0, %v325_v2, 0.0 }
  0x2f   : > { %843 = vrcp.f32 %v315_v63  ;;  %v337_v5 = vadd.f32 %v336_v3, %v335_v1  ;;  %v340_v11 = vsub.f32 %v971_v26, %v332_v4 }
  0x31   : > { %v339_v16 = vadd.f32 %v338_v6, %v337_v5 }
  0x33   : > { %v341_v19 = vsub.f32 %v976_v30, %v339_v16 }
  0x39   : > { %v1019_v17 = vpop.eup %841 }
  0x3a   : > { %v342_v18 = vmul.f32 %v1019_v17, %v340_v11 }
  0x3c   : > { %v344_v20 = vmul.f32 %v936_v7, %v342_v18  ;;  %v346_v21 = vmul.f32 %v940_v9, %v342_v18  ;;  %v348_v22 = vmul.f32 %v944_v12, %v342_v18  ;;  %v350_v23 = vmul.f32 %v948_v14, %v342_v18  ;;  %v1027_v24 = vpop.eup %843 }
  0x3d   : > { %v343_v31 = vmul.f32 %v1027_v24, %v341_v19 }
  0x3e   : > { %v352_v25 = vadd.f32 %v344_v20, %v279_v32  ;;  %v354_v27 = vadd.f32 %v346_v21, %v281_v33  ;;  %v356_v28 = vadd.f32 %v348_v22, %v283_v34  ;;  %v358_v29 = vadd.f32 %v350_v23, %v285_v36  ;;  %v1043_v32 = vld [vmem:[%s1213_s2 + $0x2] ss:$0 sm:$0xff]  ;;  %v1048_v33 = vld [vmem:[%s1213_s2 + $0x3] ss:$0 sm:$0xff] }
  0x3f   : > { %v345_v34 = vmul.f32 %v938_v8, %v343_v31  ;;  %v347_v36 = vmul.f32 %v942_v10, %v343_v31  ;;  %v349_v44 = vmul.f32 %v946_v13, %v343_v31  ;;  %v351_v46 = vmul.f32 %v950_v15, %v343_v31 }
  0x40   : > { %v360_v37 = vmax.f32 %v352_v25, 0.0  ;;  %v362_v39 = vmax.f32 %v354_v27, 0.0  ;;  %v364_v40 = vmax.f32 %v356_v28, 0.0  ;;  %v366_v41 = vmax.f32 %v358_v29, 0.0 }
  0x41   : > { %v353_v51 = vadd.f32 %v345_v34, %v991_v38  ;;  %v355_v52 = vadd.f32 %v347_v36, %v282_v43  ;;  %v357_v53 = vadd.f32 %v349_v44, %v284_v45  ;;  %v359_v54 = vadd.f32 %v351_v46, %v286_v56 }
  0x42   : > { %v368_v47 = vmin.f32 %v360_v37, 1.0  ;;  %v370_v48 = vmin.f32 %v362_v39, 1.0  ;;  %v372_v49 = vmin.f32 %v364_v40, 1.0  ;;  %v374_v50 = vmin.f32 %v366_v41, 1.0 }
  0x43   : > { %v361_v60 = vmax.f32 %v353_v51, 0.0  ;;  %v363_v61 = vmax.f32 %v355_v52, 0.0  ;;  %v365_v62 = vmax.f32 %v357_v53, 0.0  ;;  %v367_v63 = vmax.f32 %v359_v54, 0.0 }
  0x44   : > { %v400_v55 = vmul.f32 %v1033_v35, %v368_v47  ;;  %v402_v57 = vmul.f32 %v1038_v42, %v370_v48  ;;  %v404_v58 = vmul.f32 %v1043_v32, %v372_v49  ;;  %v406_v59 = vmul.f32 %v1048_v33, %v374_v50 }
  0x45   : > { %v369_v38 = vmin.f32 %v361_v60, 1.0  ;;  %v371_v43 = vmin.f32 %v363_v61, 1.0  ;;  %v373_v45 = vmin.f32 %v365_v62, 1.0  ;;  %v375_v56 = vmin.f32 %v367_v63, 1.0 }
  0x46   : > { %v408_v0 = vsub.f32 %v352_v25, %v400_v55  ;;  %v410_v1 = vsub.f32 %v354_v27, %v402_v57  ;;  %v412_v2 = vsub.f32 %v356_v28, %v404_v58  ;;  %v414_v3 = vsub.f32 %v358_v29, %v406_v59 }
  0x47   : > { %v401_v16 = vmul.f32 %v1033_v35, %v369_v38  ;;  %v403_v18 = vmul.f32 %v1038_v42, %v371_v43  ;;  %v405_v19 = vmul.f32 %v1043_v32, %v373_v45  ;;  %v407_v23 = vmul.f32 %v1048_v33, %v375_v56 }
  0x48   : > { %v1059_v4 = vmul.f32 0.01, %v408_v0  ;;  %v1061_v5 = vmul.f32 0.01, %v410_v1  ;;  %v1063_v6 = vmul.f32 0.01, %v412_v2 }
  0x49   : > { %v1065_v11 = vmul.f32 0.01, %v414_v3  ;;  %v409_v27 = vsub.f32 %v353_v51, %v401_v16  ;;  %v411_v28 = vsub.f32 %v355_v52, %v403_v18  ;;  %v413_v29 = vsub.f32 %v357_v53, %v405_v19 }
  0x4a   : > { %v424_v20 = vmul.f32 100.0, %v1059_v4  ;;  %v426_v21 = vmul.f32 100.0, %v1061_v5  ;;  %v428_v22 = vmul.f32 100.0, %v1063_v6  ;;  %v415_v40 = vsub.f32 %v359_v54, %v407_v23 }
  0x4b   : > { %v430_v25 = vmul.f32 100.0, %v1065_v11  ;;  %v1075_v34 = vmul.f32 0.01, %v409_v27  ;;  %v1077_v36 = vmul.f32 0.01, %v411_v28 }
  0x4c   : > { %v432_v31 = vsub.f32 %v400_v55, %v424_v20  ;;  %v434_v37 = vsub.f32 %v402_v57, %v426_v21  ;;  %v436_v39 = vsub.f32 %v404_v58, %v428_v22  ;;  %v1079_v44 = vmul.f32 0.01, %v413_v29 }
  0x4d   : > { %v438_v41 = vsub.f32 %v406_v59, %v430_v25  ;;  %v1084_v49 = vmul.f32 0.01, %v415_v40  ;;  %v425_v51 = vmul.f32 100.0, %v1075_v34  ;;  %v427_v52 = vmul.f32 100.0, %v1077_v36 }
  0x4e   : > { %v440_v46 = vmul.f32 %v936_v7, %v432_v31  ;;  %v442_v47 = vmul.f32 %v940_v9, %v434_v37  ;;  %v444_v48 = vmul.f32 %v944_v12, %v436_v39  ;;  %v429_v53 = vmul.f32 100.0, %v1079_v44 }
  0x4f   : > { %v446_v50 = vmul.f32 %v948_v14, %v438_v41  ;;  %v431_v58 = vmul.f32 100.0, %v1084_v49  ;;  %v433_v60 = vsub.f32 %v401_v16, %v425_v51  ;;  %v435_v61 = vsub.f32 %v403_v18, %v427_v52 }
  0x50   : > { %v448_v54 = vsel %vm299_vm0, %v440_v46, 0.0  ;;  %v449_v55 = vsel %vm299_vm0, %v442_v47, 0.0  ;;  %v451_v57 = vsel %vm299_vm0, %v444_v48, 0.0  ;;  %v437_v63 = vsub.f32 %v405_v19, %v429_v53 }
  0x51   : > { %v450_v59 = vadd.f32 %v449_v55, %v448_v54  ;;  %v453_v62 = vsel %vm299_vm0, %v446_v50, 0.0  ;;  %v439_v0 = vsub.f32 %v407_v23, %v431_v58  ;;  %v441_v2 = vmul.f32 %v938_v8, %v433_v60 }
  0x52   : > { %v443_v3 = vmul.f32 %v942_v10, %v435_v61  ;;  %v445_v38 = vmul.f32 %v946_v13, %v437_v63 }
  0x53   : > { %v452_v1 = vadd.f32 %v451_v57, %v450_v59  ;;  %v447_v43 = vmul.f32 %v950_v15, %v439_v0  ;;  %v455_v56 = vsel %vm299_vm0, %v441_v2, 0.0 }
  0x54   : > { %v456_v27 = vsel %vm299_vm0, %v443_v3, 0.0  ;;  %v458_v18 = vsel %vm299_vm0, %v445_v38, 0.0 }
  0x55   : > { %v454_v45 = vadd.f32 %v453_v62, %v452_v1  ;;  %v457_v16 = vadd.f32 %v456_v27, %v455_v56  ;;  %v460_v23 = vsel %vm299_vm0, %v447_v43, 0.0 }
  0x57   : > { %v462_v19 = vsub.f32 %v971_v26, %v454_v45  ;;  %v459_v28 = vadd.f32 %v458_v18, %v457_v16 }
  0x59   : > { %v464_v29 = vmul.f32 %v1019_v17, %v462_v19  ;;  %v461_v40 = vadd.f32 %v460_v23, %v459_v28 }
  0x5b   : > { %v466_v46 = vmul.f32 %v936_v7, %v464_v29  ;;  %v468_v47 = vmul.f32 %v940_v9, %v464_v29  ;;  %v470_v48 = vmul.f32 %v944_v12, %v464_v29  ;;  %v472_v50 = vmul.f32 %v948_v14, %v464_v29 }
  0x5c   : > { %v463_v54 = vsub.f32 %v976_v30, %v461_v40 }
  0x5d   : > { %v474_v55 = vadd.f32 %v466_v46, %v432_v31  ;;  %v476_v57 = vadd.f32 %v468_v47, %v434_v37  ;;  %v478_v59 = vadd.f32 %v470_v48, %v436_v39  ;;  %v480_v62 = vadd.f32 %v472_v50, %v438_v41 }
  0x5e   : > { %v465_v1 = vmul.f32 %v1027_v24, %v463_v54 }
  0x5f   : > { %v482_v2 = vadd.f32 %v474_v55, %v424_v20  ;;  %v484_v3 = vadd.f32 %v476_v57, %v426_v21  ;;  %v486_v38 = vadd.f32 %v478_v59, %v428_v22  ;;  %v488_v43 = vadd.f32 %v480_v62, %v430_v25 }
  0x60   : > { %v467_v45 = vmul.f32 %v938_v8, %v465_v1  ;;  %v469_v56 = vmul.f32 %v942_v10, %v465_v1  ;;  %v471_v27 = vmul.f32 %v946_v13, %v465_v1  ;;  %v473_v16 = vmul.f32 %v950_v15, %v465_v1 }
  0x61   : > { %v490_v18 = vmax.f32 %v482_v2, 0.0  ;;  %v492_v19 = vmax.f32 %v484_v3, 0.0  ;;  %v494_v31 = vmax.f32 %v486_v38, 0.0  ;;  %v496_v37 = vmax.f32 %v488_v43, 0.0 }
  0x62   : > { %v475_v39 = vadd.f32 %v467_v45, %v433_v60  ;;  %v477_v41 = vadd.f32 %v469_v56, %v435_v61  ;;  %v479_v23 = vadd.f32 %v471_v27, %v437_v63  ;;  %v481_v28 = vadd.f32 %v473_v16, %v439_v0 }
  0x63   : > { %v498_v20 = vmin.f32 %v490_v18, 1.0  ;;  %v500_v21 = vmin.f32 %v492_v19, 1.0  ;;  %v502_v22 = vmin.f32 %v494_v31, 1.0  ;;  %v504_v25 = vmin.f32 %v496_v37, 1.0 }
  0x64   : > { %v483_v29 = vadd.f32 %v475_v39, %v425_v51  ;;  %v485_v40 = vadd.f32 %v477_v41, %v427_v52  ;;  %v487_v46 = vadd.f32 %v479_v23, %v429_v53  ;;  %v489_v47 = vadd.f32 %v481_v28, %v431_v58 }
  0x65   : > { %v506_v48 = vmul.f32 %v1033_v35, %v498_v20  ;;  %v508_v50 = vmul.f32 %v1038_v42, %v500_v21  ;;  %v510_v54 = vmul.f32 %v1043_v32, %v502_v22  ;;  %v512_v1 = vmul.f32 %v1048_v33, %v504_v25 }
  0x66   : > { %v491_v60 = vmax.f32 %v483_v29, 0.0  ;;  %v493_v61 = vmax.f32 %v485_v40, 0.0  ;;  %v495_v63 = vmax.f32 %v487_v46, 0.0  ;;  %v497_v0 = vmax.f32 %v489_v47, 0.0 }
  0x67   : > { %v514_v2 = vsub.f32 %v474_v55, %v506_v48  ;;  %v516_v3 = vsub.f32 %v476_v57, %v508_v50  ;;  %v518_v38 = vsub.f32 %v478_v59, %v510_v54  ;;  %v520_v43 = vsub.f32 %v480_v62, %v512_v1 }
  0x68   : > { %v499_v51 = vmin.f32 %v491_v60, 1.0  ;;  %v501_v52 = vmin.f32 %v493_v61, 1.0  ;;  %v503_v53 = vmin.f32 %v495_v63, 1.0  ;;  %v505_v58 = vmin.f32 %v497_v0, 1.0 }
  0x69   : > { %v522_v45 = vmul.f32 0.01, %v514_v2  ;;  %v524_v56 = vmul.f32 0.01, %v516_v3  ;;  %v526_v27 = vmul.f32 0.01, %v518_v38 }
  0x6a   : > { %v528_v16 = vmul.f32 0.01, %v520_v43  ;;  %v507_v18 = vmul.f32 %v1033_v35, %v499_v51  ;;  %v509_v19 = vmul.f32 %v1038_v42, %v501_v52  ;;  %v511_v31 = vmul.f32 %v1043_v32, %v503_v53 }
  0x6b   : > { %v530_v37 = vadd.f32 %v522_v45, %v1059_v4  ;;  %v532_v55 = vadd.f32 %v524_v56, %v1061_v5  ;;  %v534_v57 = vadd.f32 %v526_v27, %v1063_v6  ;;  %v513_v59 = vmul.f32 %v1048_v33, %v505_v58 }
  0x6c   : > { %v536_v62 = vadd.f32 %v528_v16, %v1065_v11  ;;  %v515_v20 = vsub.f32 %v475_v39, %v507_v18  ;;  %v517_v21 = vsub.f32 %v477_v41, %v509_v19  ;;  %v519_v22 = vsub.f32 %v479_v23, %v511_v31 }
  0x6d   : > { %v538_v25 = vmul.f32 100.0, %v530_v37  ;;  %v540_v29 = vmul.f32 100.0, %v532_v55  ;;  %v542_v40 = vmul.f32 100.0, %v534_v57  ;;  %v521_v46 = vsub.f32 %v481_v28, %v513_v59 }
  0x6e   : > { %v544_v47 = vmul.f32 100.0, %v536_v62  ;;  %v523_v60 = vmul.f32 0.01, %v515_v20  ;;  %v525_v61 = vmul.f32 0.01, %v517_v21 }
  0x6f   : > { %v546_v63 = vsub.f32 %v506_v48, %v538_v25  ;;  %v548_v4 = vsub.f32 %v508_v50, %v540_v29  ;;  %v550_v0 = vsub.f32 %v510_v54, %v542_v40  ;;  %v527_v5 = vmul.f32 0.01, %v519_v22 }
  0x70   : > { %v552_v2 = vsub.f32 %v512_v1, %v544_v47  ;;  %v529_v6 = vmul.f32 0.01, %v521_v46  ;;  %v531_v3 = vadd.f32 %v523_v60, %v1075_v34  ;;  %v533_v11 = vadd.f32 %v525_v61, %v1077_v36 }
  0x71   : > { %v554_v39 = vmul.f32 %v936_v7, %v546_v63  ;;  %v556_v41 = vmul.f32 %v940_v9, %v548_v4  ;;  %v558_v23 = vmul.f32 %v944_v12, %v550_v0  ;;  %v535_v28 = vadd.f32 %v527_v5, %v1079_v44 }
  0x72   : > { %v560_v38 = vmul.f32 %v948_v14, %v552_v2  ;;  %v537_v48 = vadd.f32 %v529_v6, %v1084_v49  ;;  %v539_v50 = vmul.f32 100.0, %v531_v3  ;;  %v541_v54 = vmul.f32 100.0, %v533_v11 }
  0x73   : > { %v562_v1 = vsel %vm299_vm0, %v554_v39, 0.0  ;;  %v563_v34 = vsel %vm299_vm0, %v556_v41, 0.0  ;;  %v565_v36 = vsel %vm299_vm0, %v558_v23, 0.0  ;;  %v543_v43 = vmul.f32 100.0, %v535_v28 }
  0x74   : > { %v564_v51 = vadd.f32 %v563_v34, %v562_v1  ;;  %v545_v52 = vmul.f32 100.0, %v537_v48  ;;  %v547_v53 = vsub.f32 %v507_v18, %v539_v50  ;;  %v567_v58 = vsel %vm299_vm0, %v560_v38, 0.0 }
  0x75   : > { %v549_v45 = vsub.f32 %v509_v19, %v541_v54  ;;  %v551_v44 = vsub.f32 %v511_v31, %v543_v43 }
  0x76   : > { %v566_v56 = vadd.f32 %v565_v36, %v564_v51  ;;  %v553_v27 = vsub.f32 %v513_v59, %v545_v52  ;;  %v555_v49 = vmul.f32 %v938_v8, %v547_v53 }
  0x77   : > { %v557_v16 = vmul.f32 %v942_v10, %v549_v45  ;;  %v559_v37 = vmul.f32 %v946_v13, %v551_v44 }
  0x78   : > { %v568_v55 = vadd.f32 %v567_v58, %v566_v56  ;;  %v561_v57 = vmul.f32 %v950_v15, %v553_v27  ;;  %v569_v62 = vsel %vm299_vm0, %v555_v49, 0.0 }
  0x79   : > { %v570_v20 = vsel %vm299_vm0, %v557_v16, 0.0  ;;  %v572_v18 = vsel %vm299_vm0, %v559_v37, 0.0 }
  0x7a   : > { %v576_v19 = vsub.f32 %v971_v26, %v568_v55  ;;  %v571_v31 = vadd.f32 %v570_v20, %v569_v62  ;;  %v574_v59 = vsel %vm299_vm0, %v561_v57, 0.0 }
  0x7c   : > { %v578_v21 = vmul.f32 %v1019_v17, %v576_v19  ;;  %v573_v22 = vadd.f32 %v572_v18, %v571_v31 }
  0x7e   : > { %v580_v46 = vmul.f32 %v936_v7, %v578_v21  ;;  %v575_v60 = vadd.f32 %v574_v59, %v573_v22  ;;  %v582_v61 = vmul.f32 %v940_v9, %v578_v21  ;;  %v584_v5 = vmul.f32 %v944_v12, %v578_v21 }
  0x7f   : > { %v586_v6 = vmul.f32 %v948_v14, %v578_v21 }
  0x80   : > { %v588_v3 = vadd.f32 %v580_v46, %v546_v63  ;;  %v577_v11 = vsub.f32 %v976_v30, %v575_v60  ;;  %v590_v26 = vadd.f32 %v582_v61, %v548_v4  ;;  %v592_v39 = vadd.f32 %v584_v5, %v550_v0 }
  0x81   : > { %v594_v41 = vadd.f32 %v586_v6, %v552_v2 }
  0x82   : > { %v596_v23 = vadd.f32 %v588_v3, %v538_v25  ;;  %v579_v17 = vmul.f32 %v1027_v24, %v577_v11  ;;  %v598_v28 = vadd.f32 %v590_v26, %v540_v29  ;;  %v600_v38 = vadd.f32 %v592_v39, %v542_v40 }
  0x83   : > { %v602_v48 = vadd.f32 %v594_v41, %v544_v47 }
  0x84   : > { %v604_v7 = vmax.f32 %v596_v23, 0.0  ;;  %v581_v9 = vmul.f32 %v938_v8, %v579_v17  ;;  %v606_v12 = vmax.f32 %v598_v28, 0.0  ;;  %v583_v14 = vmul.f32 %v942_v10, %v579_v17 }
  0x85   : > { %v608_v63 = vmax.f32 %v600_v38, 0.0  ;;  %v585_v30 = vmul.f32 %v946_v13, %v579_v17  ;;  %v610_v4 = vmax.f32 %v602_v48, 0.0  ;;  %v587_v0 = vmul.f32 %v950_v15, %v579_v17 }
  0x86   : > { %v612_v25 = vmin.f32 %v604_v7, 1.0  ;;  %v589_v2 = vadd.f32 %v581_v9, %v547_v53  ;;  %v614_v24 = vmin.f32 %v606_v12, 1.0  ;;  %v591_v29 = vadd.f32 %v583_v14, %v549_v45 }
  0x87   : > { %v616_v40 = vmin.f32 %v608_v63, 1.0  ;;  %v593_v47 = vadd.f32 %v585_v30, %v551_v44  ;;  %v618_v1 = vmin.f32 %v610_v4, 1.0  ;;  %v595_v34 = vadd.f32 %v587_v0, %v553_v27 }
  0x88   : > { %v620_v36 = vmul.f32 %v1033_v35, %v612_v25  ;;  %v597_v8 = vadd.f32 %v589_v2, %v539_v50  ;;  %v622_v51 = vmul.f32 %v1038_v42, %v614_v24  ;;  %v599_v10 = vadd.f32 %v591_v29, %v541_v54 }
  0x89   : > { %v624_v58 = vmul.f32 %v1043_v32, %v616_v40  ;;  %v601_v13 = vadd.f32 %v593_v47, %v543_v43  ;;  %v626_v56 = vmul.f32 %v1048_v33, %v618_v1  ;;  %v603_v15 = vadd.f32 %v595_v34, %v545_v52 }
  0x8a   : > { %628 = vst.msk [vmem:[%s1165_s12] sm:$0xff] %vm299_vm0, %v620_v36  ;;  %v605_v53 = vmax.f32 %v597_v8, 0.0  ;;  %630 = vst.msk [vmem:[%s1165_s12 + $0x10] sm:$0xff] %vm299_vm0, %v622_v51  ;;  %v607_v50 = vmax.f32 %v599_v10, 0.0 }
  0x8b   : > { %632 = vst.msk [vmem:[%s1165_s12 + $0x20] sm:$0xff] %vm299_vm0, %v624_v58  ;;  %v609_v54 = vmax.f32 %v601_v13, 0.0  ;;  %634 = vst.msk [vmem:[%s1165_s12 + $0x30] sm:$0xff] %vm299_vm0, %v626_v56  ;;  %v611_v43 = vmax.f32 %v603_v15, 0.0 }
  0x8c   : > { %v613_v52 = vmin.f32 %v605_v53, 1.0  ;;  %v615_v45 = vmin.f32 %v607_v50, 1.0 }
  0x8d   : > { %v617_v44 = vmin.f32 %v609_v54, 1.0  ;;  %v619_v27 = vmin.f32 %v611_v43, 1.0  ;;  %642 = sbr.rel (!%p920_p5) target bundleno = 154 (0x9a), region = 77 }
  0x8e   : > { %v621_v49 = vmul.f32 %v1033_v35, %v613_v52  ;;  %v623_v16 = vmul.f32 %v1038_v42, %v615_v45 }
  0x8f   : > { %v625_v37 = vmul.f32 %v1043_v32, %v617_v44  ;;  %v627_v55 = vmul.f32 %v1048_v33, %v619_v27 }
  0x90   : > { %629 = vst.msk [vmem:[%s1165_s12 + $0x8] sm:$0xff] %vm299_vm0, %v621_v49  ;;  %631 = vst.msk [vmem:[%s1165_s12 + $0x18] sm:$0xff] %vm299_vm0, %v623_v16 }
  0x91   : > { %633 = vst.msk [vmem:[%s1165_s12 + $0x28] sm:$0xff] %vm299_vm0, %v625_v37  ;;  %635 = vst.msk [vmem:[%s1165_s12 + $0x38] sm:$0xff] %vm299_vm0, %v627_v55  ;;  %v688_v35 = vld [vmem:[%s1165_s12] sm:$0xff] (%p920_p5)  ;;  %v692_v32 = vld [vmem:[%s1165_s12 + $0x10] sm:$0xff] (%p920_p5) }
  0x92   : > { %v696_v57 = vld [vmem:[%s1165_s12 + $0x20] sm:$0xff]  ;;  %689 = vst [vmem:[%s645_s27] sm:$0xff] %v688_v35  ;;  %693 = vst [vmem:[%s645_s27 + $0x20] sm:$0xff] %v692_v32  ;;  %v700_v20 = vld [vmem:[%s1165_s12 + $0x30] sm:$0xff] }
  0x93   : > { %697 = vst [vmem:[%s645_s27 + $0x40] sm:$0xff] %v696_v57  ;;  %701 = vst [vmem:[%s645_s27 + $0x60] sm:$0xff] %v700_v20 }
  0x97   : > { %v690_v42 = vld [vmem:[%s1165_s12 + $0x8] sm:$0xff]  ;;  %v694_v33 = vld [vmem:[%s1165_s12 + $0x18] sm:$0xff] }
  0x98   : > { %v698_v62 = vld [vmem:[%s1165_s12 + $0x28] sm:$0xff]  ;;  %691 = vst [vmem:[%s645_s27 + $0x8] sm:$0xff] %v690_v42  ;;  %695 = vst [vmem:[%s645_s27 + $0x28] sm:$0xff] %v694_v33  ;;  %v702_v18 = vld [vmem:[%s1165_s12 + $0x38] sm:$0xff] }
  0x99   : > { %699 = vst [vmem:[%s645_s27 + $0x48] sm:$0xff] %v698_v62  ;;  %703 = vst [vmem:[%s645_s27 + $0x68] sm:$0xff] %v702_v18 }
  0x9a PF: > { %p10_p11 = scmp.ge.s32.totalorder %s908_s16, 4   ;;  %s1216_s12 = smov %s863_s13 }
  0x9b   : > { %s1217_s13 = smov %s918_s19  ;;  %s1218_s14 = smov %s908_s16 }
  0x9c   :  { %12 = sbr.rel (!%p10_p11) target bundleno = 2 (0x2), region = 149 }

</bundles_post_ra>
